<compile_context>
chip_gen: v6e
topology: v6e:2x2x1
jax: 0.10.0
libtpu: 0.0.40
codegen_flags: <defaults>
</compile_context>

<pallas_src>
import jax
import jax.numpy as jnp
from jax import lax
from jax.experimental import pallas as pl
from jax.experimental.pallas import tpu as pltpu

STATE_DIM = 4     # CartPole-v0 observation_space.shape[0]
HIDDEN_DIM = 128  # as in the reference script
ACTION_DIM = 2    # CartPole-v0 action_space.n


def policy_net_kernel(x_ref, w1_ref, b1_ref, w2_ref, b2_ref, o_ref):
    # x: (tb, S)   w1: (H, S) PyTorch layout   b1: (H, 1)
    # w2: (A, H)   b2: SMEM (A,)               o: (A, tb)  (batch on lanes)

    # fc1 + ReLU, batch-on-lanes: h = w1 @ x^T -> (H, tb).
    # K = S = 4 underfills the MXU, but this matmul is nowhere near the
    # critical path (per review: do NOT pad S / relayout w1).
    h = lax.dot_general(w1_ref[...], x_ref[...], (((1,), (1,)), ((), ())),
                        preferred_element_type=jnp.float32)          # (H, tb)
    h = jnp.maximum(h + b1_ref[...], 0.0)                            # bias bcast over lanes

    # fc2 logits, still batch-on-lanes: (A, H) @ (H, tb) -> (A, tb).
    logits = lax.dot_general(w2_ref[...], h, (((1,), (0,)), ((), ())),
                             preferred_element_type=jnp.float32)     # (A, tb)

    # 2-class softmax via the sigmoid identity on a lane-dense (1, tb) row:
    #   p1 = sigmoid(l1 - l0 + (b2[1] - b2[0])),  p0 = 1 - p1
    d = (logits[1:2, :] - logits[0:1, :]) + (b2_ref[1] - b2_ref[0])  # (1, tb)
    p1 = 1.0 / (1.0 + jnp.exp(-d))                                   # exp on EUP
    p0 = 1.0 - p1
    # Single full-lane store of the whole (A, tb) tile.
    o_ref[...] = jnp.concatenate([p0, p1], axis=0).astype(o_ref.dtype)


def _round_up(v, m):
    return ((v + m - 1) // m) * m


def policy_net_forward(x, w1, b1, w2, b2, *, block_b=1024):
    """Forward pass.

    x : (B, state_dim) float32
    w1: (hidden_dim, state_dim)  -- PyTorch Linear layout, NOT transposed
    b1: (hidden_dim,)
    w2: (action_dim, hidden_dim) -- PyTorch Linear layout, NOT transposed
    b2: (action_dim,)
    returns (B, action_dim) softmax probabilities.
    """
    B, S = x.shape
    H = w1.shape[0]
    A = w2.shape[0]
    assert A == ACTION_DIM == 2, "closed-form 2-class softmax path assumes 2 actions"

    # Lane-dense tiles must be multiples of 128 when they are not full-dim.
    block_b = _round_up(max(block_b, 128), 128)

    # Per-H bias column for the (H, tb) layout (metadata-only reshape).
    b1c = b1.reshape(H, 1)

    if B <= 256:
        # Per-step inference / small batches: one block; full-dim block shapes
        # are legal for any B (including B == 1), no padding needed.
        tb = B
    else:
        # Rollout-sized batches: >= 2 blocks so both v7x TensorCores get work,
        # tiles are multiples of 128 (lane-dense output), capped at block_b.
        # A ragged last block is handled by Pallas boundary masking (no pad/slice).
        tb = min(block_b, _round_up(pl.cdiv(B, 2), 128))
    n_blocks = pl.cdiv(B, tb)

    out = pl.pallas_call(
        policy_net_kernel,
        out_shape=jax.ShapeDtypeStruct((A, B), jnp.float32),
        grid=(n_blocks,),
        in_specs=[
            pl.BlockSpec((tb, S), lambda i: (i, 0)),              # x batch tile
            pl.BlockSpec((H, S), lambda i: (0, 0)),               # w1 resident
            pl.BlockSpec((H, 1), lambda i: (0, 0)),               # b1 resident
            pl.BlockSpec((A, H), lambda i: (0, 0)),               # w2 resident
            pl.BlockSpec(memory_space=pltpu.MemorySpace.SMEM),    # b2 scalars
        ],
        out_specs=pl.BlockSpec((A, tb), lambda i: (0, i)),        # lane-dense output
        compiler_params=pltpu.CompilerParams(
            dimension_semantics=("parallel",)),  # batch tiles shard across TCs on v7x
    )(x, w1, b1c, w2, b2)

    # (A, B) -> (B, A): tiny (2*B floats) transpose outside the kernel so the
    # in-kernel store stays full-lane unmasked.
    return out.T


def init_params(key):
    """Deterministic init mimicking PyTorch Linear default (U[-1/sqrt(fan_in), +])."""
    k1, k2, k3, k4 = jax.random.split(key, 4)
    bound1 = 1.0 / jnp.sqrt(STATE_DIM)
    bound2 = 1.0 / jnp.sqrt(HIDDEN_DIM)
    w1 = jax.random.uniform(k1, (HIDDEN_DIM, STATE_DIM), jnp.float32, -bound1, bound1)
    b1 = jax.random.uniform(k2, (HIDDEN_DIM,), jnp.float32, -bound1, bound1)
    w2 = jax.random.uniform(k3, (ACTION_DIM, HIDDEN_DIM), jnp.float32, -bound2, bound2)
    b2 = jax.random.uniform(k4, (ACTION_DIM,), jnp.float32, -bound2, bound2)
    return w1, b1, w2, b2


if __name__ == "__main__":
    key = jax.random.PRNGKey(0)
    k_x1, k_x2, k_p = jax.random.split(key, 3)
    w1, b1, w2, b2 = init_params(k_p)

    def reference(x):
        h = jnp.maximum(x @ w1.T + b1, 0.0)
        return jax.nn.softmax(h @ w2.T + b2, axis=1)

    # Small per-step case (single block, full-dim block shapes).
    x_small = jax.random.normal(k_x1, (8, STATE_DIM), jnp.float32)
    p_small = jax.block_until_ready(policy_net_forward(x_small, w1, b1, w2, b2))
    assert p_small.shape == (8, ACTION_DIM)
    assert jnp.allclose(p_small, reference(x_small), atol=1e-3, rtol=1e-3)
    assert jnp.allclose(jnp.sum(p_small, axis=1), 1.0, atol=1e-5)

    # Rollout-sized batch: multi-block "parallel" grid with a ragged last block
    # (no pad / slice round trips in the wrapper).
    x_big = jax.random.normal(k_x2, (333, STATE_DIM), jnp.float32)
    p_big = jax.block_until_ready(policy_net_forward(x_big, w1, b1, w2, b2))
    assert p_big.shape == (333, ACTION_DIM)
    assert jnp.allclose(p_big, reference(x_big), atol=1e-3, rtol=1e-3)
    assert jnp.allclose(jnp.sum(p_big, axis=1), 1.0, atol=1e-5)

    print("KERNEL_OK")
</pallas_src>

<mosaic_0001>
module attributes {stable_mosaic.version = 11 : i64} {
  func.func @policy_net_kernel(%arg0: i32, %arg1: memref<8x4xf32, #tpu.memory_space<vmem>>, %arg2: memref<128x4xf32, #tpu.memory_space<vmem>>, %arg3: memref<128x1xf32, #tpu.memory_space<vmem>>, %arg4: memref<2x128xf32, #tpu.memory_space<vmem>>, %arg5: memref<2xf32, #tpu.memory_space<smem>>, %arg6: memref<2x8xf32, #tpu.memory_space<vmem>>) attributes {dimension_semantics = [#tpu.dimension_semantics<parallel>], iteration_bounds = array<i64: 1>, scalar_prefetch = 0 : i64, scratch_operands = 0 : i64, tpu.core_type = #tpu.core_type<tc>, window_params = [{transform_indices = @transform_0, window_bounds = array<i64: 8, 4>}, {pipeline_mode = #tpu.pipeline_mode<synchronous>, transform_indices = @transform_1, window_bounds = array<i64: 128, 4>}, {pipeline_mode = #tpu.pipeline_mode<synchronous>, transform_indices = @transform_2, window_bounds = array<i64: 128, 1>}, {pipeline_mode = #tpu.pipeline_mode<synchronous>, transform_indices = @transform_3, window_bounds = array<i64: 2, 128>}, {transform_indices = @transform_4, window_bounds = array<i64: 2>}, {transform_indices = @transform_5, window_bounds = array<i64: 2, 8>}]} {
    %c0 = arith.constant 0 : index
    %c0_0 = arith.constant 0 : index
    %0 = vector.load %arg2[%c0, %c0_0] : memref<128x4xf32, #tpu.memory_space<vmem>>, vector<128x4xf32>
    %c0_1 = arith.constant 0 : index
    %c0_2 = arith.constant 0 : index
    %1 = vector.load %arg1[%c0_1, %c0_2] : memref<8x4xf32, #tpu.memory_space<vmem>>, vector<8x4xf32>
    %cst = arith.constant dense<0.000000e+00> : vector<128x8xf32>
    %2 = tpu.matmul %0, %1, %cst {dimension_numbers = #tpu.dot_dimension_numbers<[1], [1], [0], [0], [0, 0, 1, 0], [], []>} : vector<128x4xf32>, vector<8x4xf32>, vector<128x8xf32> -> vector<128x8xf32>
    %c0_3 = arith.constant 0 : index
    %c0_4 = arith.constant 0 : index
    %3 = vector.load %arg3[%c0_3, %c0_4] : memref<128x1xf32, #tpu.memory_space<vmem>>, vector<128x1xf32>
    %4 = vector.broadcast %3 : vector<128x1xf32> to vector<128x8xf32>
    %5 = arith.addf %2, %4 : vector<128x8xf32>
    %cst_5 = arith.constant 0.000000e+00 : f32
    %6 = vector.broadcast %cst_5 : f32 to vector<128x8xf32>
    %7 = arith.maximumf %5, %6 : vector<128x8xf32>
    %c0_6 = arith.constant 0 : index
    %c0_7 = arith.constant 0 : index
    %8 = vector.load %arg4[%c0_6, %c0_7] : memref<2x128xf32, #tpu.memory_space<vmem>>, vector<2x128xf32>
    %cst_8 = arith.constant dense<0.000000e+00> : vector<2x8xf32>
    %9 = tpu.matmul %8, %7, %cst_8 {dimension_numbers = #tpu.dot_dimension_numbers<[1], [0], [0], [1], [0, 0, 1, 1], [], []>} : vector<2x128xf32>, vector<128x8xf32>, vector<2x8xf32> -> vector<2x8xf32>
    %10 = vector.extract_strided_slice %9 {offsets = [1, 0], sizes = [1, 8], strides = [1, 1]} : vector<2x8xf32> to vector<1x8xf32>
    %11 = vector.extract_strided_slice %9 {offsets = [0, 0], sizes = [1, 8], strides = [1, 1]} : vector<2x8xf32> to vector<1x8xf32>
    %12 = arith.subf %10, %11 : vector<1x8xf32>
    %c1 = arith.constant 1 : index
    %13 = memref.load %arg5[%c1] : memref<2xf32, #tpu.memory_space<smem>>
    %c0_9 = arith.constant 0 : index
    %14 = memref.load %arg5[%c0_9] : memref<2xf32, #tpu.memory_space<smem>>
    %15 = arith.subf %13, %14 : f32
    %16 = vector.broadcast %15 : f32 to vector<1x8xf32>
    %17 = arith.addf %12, %16 : vector<1x8xf32>
    %cst_10 = arith.constant 0.000000e+00 : f32
    %18 = vector.broadcast %cst_10 : f32 to vector<1x8xf32>
    %19 = arith.subf %18, %17 : vector<1x8xf32>
    %20 = math.exp %19 : vector<1x8xf32>
    %cst_11 = arith.constant 1.000000e+00 : f32
    %21 = vector.broadcast %cst_11 : f32 to vector<1x8xf32>
    %22 = arith.addf %21, %20 : vector<1x8xf32>
    %cst_12 = arith.constant 1.000000e+00 : f32
    %23 = vector.broadcast %cst_12 : f32 to vector<1x8xf32>
    %24 = arith.divf %23, %22 : vector<1x8xf32>
    %cst_13 = arith.constant 1.000000e+00 : f32
    %25 = vector.broadcast %cst_13 : f32 to vector<1x8xf32>
    %26 = arith.subf %25, %24 : vector<1x8xf32>
    %27 = tpu.concatenate %26, %24 in 0 : vector<1x8xf32>, vector<1x8xf32> -> vector<2x8xf32>
    %c0_14 = arith.constant 0 : index
    %c0_15 = arith.constant 0 : index
    %28 = vector.load %arg6[%c0_14, %c0_15] : memref<2x8xf32, #tpu.memory_space<vmem>>, vector<2x8xf32>
    tpu.vector_store %arg6[%c0_14, %c0_15], %27 {strides = array<i32>} : memref<2x8xf32, #tpu.memory_space<vmem>>, vector<2x8xf32>,
    return
  }
  func.func @transform_0(%arg0: i32) -> (i32, i32) {
    %c0_i32 = arith.constant 0 : i32
    %c0_i32_0 = arith.constant 0 : i32
    return %arg0, %c0_i32 : i32, i32
  }
  func.func @transform_1(%arg0: i32) -> (i32, i32) {
    %c0_i32 = arith.constant 0 : i32
    %c0_i32_0 = arith.constant 0 : i32
    %c0_i32_1 = arith.constant 0 : i32
    return %c0_i32, %c0_i32_0 : i32, i32
  }
  func.func @transform_2(%arg0: i32) -> (i32, i32) {
    %c0_i32 = arith.constant 0 : i32
    %c0_i32_0 = arith.constant 0 : i32
    %c0_i32_1 = arith.constant 0 : i32
    return %c0_i32, %c0_i32_0 : i32, i32
  }
  func.func @transform_3(%arg0: i32) -> (i32, i32) {
    %c0_i32 = arith.constant 0 : i32
    %c0_i32_0 = arith.constant 0 : i32
    %c0_i32_1 = arith.constant 0 : i32
    return %c0_i32, %c0_i32_0 : i32, i32
  }
  func.func @transform_4(%arg0: i32) -> i32 {
    %c0_i32 = arith.constant 0 : i32
    %c0_i32_0 = arith.constant 0 : i32
    return %c0_i32 : i32
  }
  func.func @transform_5(%arg0: i32) -> (i32, i32) {
    %c0_i32 = arith.constant 0 : i32
    %c0_i32_0 = arith.constant 0 : i32
    return %c0_i32, %arg0 : i32, i32
  }
}

</mosaic_0001>

<bundles_post_ra>
// kernel: tpu_custom_call.1
= control target key start
LH: loop header
LB: loop body
LE: loop exit
PB: predicated region body
PF: predicated region fallthrough
CT: control target
= control target key end

     0   :  { %10 = vsyncpa [#allocation4], 0  ;;  %s819_s0 = inlined_call_operand.vmem [shape: f32[8,4], index: 0, kind: input, shape index: {}]   ;;  %s820_s1 = inlined_call_operand.vmem [shape: f32[128,4], index: 1, kind: input, shape index: {}]   ;;  %s821_s2 = inlined_call_operand.vmem [shape: f32[128,1], index: 2, kind: input, shape index: {}]   ;;  %s822_s3 = inlined_call_operand.vmem [shape: f32[2,128], index: 3, kind: input, shape index: {}]   ;;  %s823_s4 = inlined_call_operand.vmem [shape: f32[2], index: 4, kind: input, shape index: {}]   ;;  %s824_s5 = inlined_call_operand.hbm [shape: f32[2,8], index: 5, kind: output, shape index: {}]  }
   0x1   :  { %11 = vsyncpa [#allocation3], 0  ;;  %s26_s20 = sshll.u32 %s823_s4, 4  ;;  %s27_s20 = int_to_ptr.vmem [resolvable:$true] %s26_s20 }
   0x2   :  { %s593_s21 = scalar_lea.vmem %s27_s20, 16  ;;  %p598_p1 = scmp.lt.s32.totalorder %s27_s20, %s27_s20 }
   0x3   :  { %p594_p0 = scmp.ne.s32.totalorder %s27_s20, %s593_s21  ;;  %p599_p2 = scmp.lt.s32.totalorder %s593_s21, %s593_s21 }
   0x5   :  { %p600_p3 = por %p599_p2, %p598_p1 }
   0x7   :  { %p601_p4 = pnand %p600_p3, %p594_p0 }
   0x9   :  { %604 = shalt.err (!%p601_p4)
}
   0xa   :  { %s629_s22 = smov [#allocation2]  }
   0xb   :  { %29 = dma.vmem_to_smem %s27_s20, 16, %s629_s22, [#allocation4]  }
   0xc   :  { %625 = dma.done.wait [#allocation4], 16  }
   0xd   :  { %626 = vsyncadd [#allocation4], 4294967280 }
   0xe   :  { %33 = sfence }
   0xf   :  { %v50_v0 = vld [vmem:[%s819_s0] sm:$0xff]  ;;  %vm147_vm0 = vcmask 31744   ;;  %v35_v2 = vld [vmem:[%s820_s1 + $0x8] sm:$0xff]  ;;  %v630_v3 = vmov 0   ;;  %v36_v4 = vld [vmem:[%s820_s1 + $0x10] sm:$0xff]  ;;  %v631_v34 = vmov 0.0  }
  0x10   :  { %v34_v1 = vld [vmem:[%s820_s1] sm:$0xff]  ;;  %521 = vmatprep.subr.msk.mxu0 %vm147_vm0, %v50_v0  ;;  %587 = vset.pattern.permute.xlu0 %v630_v3  ;;  %v66_v5 = vld [vmem:[%s821_s2 + $0x78] sm:$0xff]  ;;  %v64_v7 = vld [vmem:[%s821_s2 + $0x68] sm:$0xff]  ;;  %vm632_vm1 = vmmov 0   ;;  %s486_s8 = sld [smem:[#allocation2 + $0x1]]  ;;  %vm450_vm2 = vcmask 1040384  }
  0x11   :  { %523 = vmatprep.mubr.msk.f32.mxu0 %vm147_vm0, %v34_v1  ;;  %522 = vmatpush3.xpose.msk.msra.mxu0 %vm147_vm0, %v50_v0  ;;  %v37_v6 = vld [vmem:[%s820_s1 + $0x18] sm:$0xff]  ;;  %v38_v8 = vld [vmem:[%s820_s1 + $0x20] sm:$0xff]  ;;  %v65_v9 = vld [vmem:[%s821_s2 + $0x70] sm:$0xff]  ;;  %s436_s9 = sld [smem:[#allocation2]]  ;;  %vm452_vm3 = vcmask 58368  }
  0x12   :  { %588 = vset.pattern.permute.xlu1 %v630_v3  ;;  %144 = vperm.xlu0 %587, %v66_v5   ;;  %v63_v10 = vld [vmem:[%s821_s2 + $0x60] sm:$0xff]  ;;  %v39_v11 = vld [vmem:[%s820_s1 + $0x28] sm:$0xff]  ;;  %v40_v12 = vld [vmem:[%s820_s1 + $0x30] sm:$0xff] }
  0x13   :  { %134 = vperm.xlu1 %588, %v64_v7   ;;  %v62_v13 = vld [vmem:[%s821_s2 + $0x58] sm:$0xff]  ;;  %v61_v14 = vld [vmem:[%s821_s2 + $0x50] sm:$0xff]  ;;  %v42_v16 = vld [vmem:[%s820_s1 + $0x40] sm:$0xff]  ;;  %547 = vmatprep.subr.mxu1 %v631_v34 }
  0x14   :  { %524 = vmatmul.mubr.msk.f32.vlgmr.msra.gmra.mxu0 %vm147_vm0, %v35_v2  ;;  %v41_v15 = vld [vmem:[%s820_s1 + $0x38] sm:$0xff]  ;;  %v60_v17 = vld [vmem:[%s821_s2 + $0x48] sm:$0xff]  ;;  %v59_v18 = vld [vmem:[%s821_s2 + $0x40] sm:$0xff]  ;;  %579 = vmatprep.mubr.msk.f32.mxu1 %vm632_vm1, %v631_v34 }
  0x15   :  { %526 = vmatprep.mubr.msk.f32.mxu0 %vm147_vm0, %v36_v4  ;;  %v43_v19 = vld [vmem:[%s820_s1 + $0x48] sm:$0xff]  ;;  %v44_v20 = vld [vmem:[%s820_s1 + $0x50] sm:$0xff]  ;;  %v58_v21 = vld [vmem:[%s821_s2 + $0x38] sm:$0xff] }
  0x16   :  { %139 = vperm.xlu0 %587, %v65_v9   ;;  %v57_v22 = vld [vmem:[%s821_s2 + $0x30] sm:$0xff]  ;;  %v45_v23 = vld [vmem:[%s820_s1 + $0x58] sm:$0xff]  ;;  %v46_v24 = vld [vmem:[%s820_s1 + $0x60] sm:$0xff] }
  0x17   :  { %129 = vperm.xlu1 %588, %v63_v10   ;;  %v56_v25 = vld [vmem:[%s821_s2 + $0x28] sm:$0xff]  ;;  %v55_v26 = vld [vmem:[%s821_s2 + $0x20] sm:$0xff]  ;;  %v48_v28 = vld [vmem:[%s820_s1 + $0x70] sm:$0xff]  ;;  %s437_s10 = ssub.f32 %s486_s8, %s436_s9 }
  0x18   :  { %527 = vmatmul.mubr.msk.f32.gmra.mxu0 %vm147_vm0, %v37_v6  ;;  %v47_v27 = vld [vmem:[%s820_s1 + $0x68] sm:$0xff]  ;;  %v54_v29 = vld [vmem:[%s821_s2 + $0x18] sm:$0xff]  ;;  %v53_v30 = vld [vmem:[%s821_s2 + $0x10] sm:$0xff] }
  0x19   :  { %529 = vmatprep.mubr.msk.f32.mxu0 %vm147_vm0, %v38_v8  ;;  %v49_v31 = vld [vmem:[%s820_s1 + $0x78] sm:$0xff]  ;;  %v52_v32 = vld [vmem:[%s821_s2 + $0x8] sm:$0xff]  ;;  %v51_v33 = vld [vmem:[%s821_s2] sm:$0xff] }
  0x1a   :  { %124 = vperm.xlu0 %587, %v62_v13  }
  0x1b   :  { %119 = vperm.xlu1 %588, %v61_v14  }
  0x1c   :  { %530 = vmatmul.mubr.msk.f32.gmra.mxu0 %vm147_vm0, %v39_v11 }
  0x1d   :  { %532 = vmatprep.mubr.msk.f32.mxu0 %vm147_vm0, %v40_v12 }
  0x1e   :  { %114 = vperm.xlu0 %587, %v60_v17  }
  0x1f   :  { %109 = vperm.xlu1 %588, %v59_v18  }
  0x20   :  { %533 = vmatmul.mubr.msk.f32.gmra.mxu0 %vm147_vm0, %v41_v15 }
  0x21   :  { %535 = vmatprep.mubr.msk.f32.mxu0 %vm147_vm0, %v42_v16 }
  0x22   :  { %104 = vperm.xlu0 %587, %v58_v21  }
  0x23   :  { %99 = vperm.xlu1 %588, %v57_v22  }
  0x24   :  { %536 = vmatmul.mubr.msk.f32.gmra.mxu0 %vm147_vm0, %v43_v19 }
  0x25   :  { %538 = vmatprep.mubr.msk.f32.mxu0 %vm147_vm0, %v44_v20 }
  0x26   :  { %94 = vperm.xlu0 %587, %v56_v25  }
  0x27   :  { %89 = vperm.xlu1 %588, %v55_v26  }
  0x28   :  { %539 = vmatmul.mubr.msk.f32.gmra.mxu0 %vm147_vm0, %v45_v23 }
  0x29   :  { %541 = vmatprep.mubr.msk.f32.mxu0 %vm147_vm0, %v46_v24 }
  0x2a   :  { %84 = vperm.xlu0 %587, %v54_v29  }
  0x2b   :  { %79 = vperm.xlu1 %588, %v53_v30  }
  0x2c   :  { %542 = vmatmul.mubr.msk.f32.gmra.mxu0 %vm147_vm0, %v47_v27 }
  0x2d   :  { %544 = vmatprep.mubr.msk.f32.mxu0 %vm147_vm0, %v48_v28 }
  0x2e   :  { %74 = vperm.xlu0 %587, %v52_v32  }
  0x2f   :  { %69 = vperm.xlu1 %588, %v51_v33  }
  0x30   :  { %545 = vmatmul.mubr.msk.f32.gmra.mxu0 %vm147_vm0, %v49_v31 }
  0x8d   :  { %v145_v40 = vpop.permute.xlu0 %144 }
  0x8e   :  { %v135_v42 = vpop.permute.xlu1 %134 }
  0x91   :  { %v140_v45 = vpop.permute.xlu0 %139 }
  0x92   :  { %v130_v47 = vpop.permute.xlu1 %129 }
  0x95   :  { %v125_v50 = vpop.permute.xlu0 %124 }
  0x96   :  { %v120_v52 = vpop.permute.xlu1 %119 }
  0x99   :  { %v115_v55 = vpop.permute.xlu0 %114 }
  0x9a   :  { %v110_v58 = vpop.permute.xlu1 %109 }
  0x9d   :  { %v105_v1 = vpop.permute.xlu0 %104 }
  0x9e   :  { %v100_v4 = vpop.permute.xlu1 %99 }
  0xa1   :  { %v95_v9 = vpop.permute.xlu0 %94 }
  0xa2   :  { %v90_v12 = vpop.permute.xlu1 %89 }
  0xa5   :  { %v85_v17 = vpop.permute.xlu0 %84 }
  0xa6   :  { %v80_v20 = vpop.permute.xlu1 %79 }
  0xa9   :  { %v75_v25 = vpop.permute.xlu0 %74 }
  0xaa   :  { %v70_v28 = vpop.permute.xlu1 %69 }
  0xd4   :  { %v786_v35 = vpop.f32.mrf.mxu0 }
  0xd5   :  { %v271_v29 = vadd.f32 %v786_v35, %v75_v25  ;;  %v360_v35 = vld [vmem:[%s822_s3] sm:$0x3]  ;;  %s633_s3 = smov [#allocation5]  }
  0xd6   :  { %v788_v36 = vpop.f32.mrf.mxu0  ;;  %s460_s11 = sshll.u32 %s633_s3, 4  ;;  %s461_s11 = int_to_ptr.vmem [resolvable:$true] %s460_s11 }
  0xd7   :  { %v266_v31 = vadd.f32 %v788_v36, %v70_v28  ;;  %v345_v33 = vmax.f32 %v271_v29, 0.0  ;;  %s605_s12 = scalar_lea.vmem %s461_s11, 32  ;;  %p610_p6 = scmp.lt.s32.totalorder %s461_s11, %s461_s11 }
  0xd8   :  { %v790_v37 = vpop.f32.mrf.mxu0  ;;  %p606_p5 = scmp.ne.s32.totalorder %s461_s11, %s605_s12  ;;  %p611_p7 = scmp.lt.s32.totalorder %s605_s12, %s605_s12 }
  0xd9   :  { %v281_v23 = vadd.f32 %v790_v37, %v85_v17  ;;  %v344_v37 = vmax.f32 %v266_v31, 0.0 }
  0xda   :  { %v792_v38 = vpop.f32.mrf.mxu0  ;;  %p612_p8 = por %p611_p7, %p610_p6 }
  0xdb   :  { %v276_v26 = vadd.f32 %v792_v38, %v80_v20  ;;  %v347_v30 = vmax.f32 %v281_v23, 0.0 }
  0xdc   :  { %v531_v39 = vpop.f32.mrf.mxu0  ;;  %p613_p9 = pnand %p612_p8, %p606_p5 }
  0xdd   :  { %v291_v18 = vadd.f32 %v531_v39, %v95_v9  ;;  %v346_v32 = vmax.f32 %v276_v26, 0.0  ;;  %v438_v39 = vstv %s437_s10 }
  0xde   :  { %v285_v41 = vpop.f32.mrf.mxu0 }
  0xdf   :  { %v286_v21 = vadd.f32 %v285_v41, %v90_v12  ;;  %v349_v24 = vmax.f32 %v291_v18, 0.0 }
  0xe0   :  { %v534_v43 = vpop.f32.mrf.mxu0 }
  0xe1   :  { %v301_v13 = vadd.f32 %v534_v43, %v105_v1  ;;  %v348_v27 = vmax.f32 %v286_v21, 0.0 }
  0xe2   :  { %v295_v44 = vpop.f32.mrf.mxu0 }
  0xe3   :  { %v296_v15 = vadd.f32 %v295_v44, %v100_v4  ;;  %v351_v19 = vmax.f32 %v301_v13, 0.0 }
  0xe4   :  { %v537_v46 = vpop.f32.mrf.mxu0 }
  0xe5   :  { %v311_v7 = vadd.f32 %v537_v46, %v115_v55  ;;  %v350_v22 = vmax.f32 %v296_v15, 0.0 }
  0xe6   :  { %v305_v48 = vpop.f32.mrf.mxu0 }
  0xe7   :  { %v306_v10 = vadd.f32 %v305_v48, %v110_v58  ;;  %v353_v14 = vmax.f32 %v311_v7, 0.0 }
  0xe8   :  { %v540_v49 = vpop.f32.mrf.mxu0 }
  0xe9   :  { %v321_v2 = vadd.f32 %v540_v49, %v125_v50  ;;  %v352_v16 = vmax.f32 %v306_v10, 0.0 }
  0xea   :  { %v315_v51 = vpop.f32.mrf.mxu0 }
  0xeb   :  { %v316_v5 = vadd.f32 %v315_v51, %v120_v52  ;;  %v355_v8 = vmax.f32 %v321_v2, 0.0 }
  0xec   :  { %v543_v53 = vpop.f32.mrf.mxu0 }
  0xed   :  { %v331_v60 = vadd.f32 %v543_v53, %v135_v42  ;;  %v354_v11 = vmax.f32 %v316_v5, 0.0 }
  0xee   :  { %v325_v54 = vpop.f32.mrf.mxu0 }
  0xef   :  { %v326_v63 = vadd.f32 %v325_v54, %v130_v47  ;;  %v357_v3 = vmax.f32 %v331_v60, 0.0 }
  0xf0   :  { %v546_v56 = vpop.f32.mrf.mxu0 }
  0xf1   :  { %v341_v57 = vadd.f32 %v546_v56, %v145_v40  ;;  %v356_v6 = vmax.f32 %v326_v63, 0.0 }
  0xf2   :  { %v335_v59 = vpop.f32.mrf.mxu0 }
  0xf3   :  { %v359_v61 = vmax.f32 %v341_v57, 0.0  ;;  %v336_v62 = vadd.f32 %v335_v59, %v140_v45 }
  0xf5   :  { %v358_v0 = vmax.f32 %v336_v62, 0.0  ;;  %548 = vmatpush3.msra.mxu1 %v359_v61 }
  0xf6   :  { %549 = vmatprep.subr.mxu1 %v631_v34 }
  0xf7   :  { %550 = vmatpush3.msra.mxu1 %v358_v0 }
  0xf8   :  { %551 = vmatprep.subr.mxu1 %v631_v34 }
  0xf9   :  { %552 = vmatpush3.msra.mxu1 %v357_v3 }
  0xfa   :  { %553 = vmatprep.subr.mxu1 %v631_v34 }
  0xfb   :  { %554 = vmatpush3.msra.mxu1 %v356_v6 }
  0xfc   :  { %555 = vmatprep.subr.mxu1 %v631_v34 }
  0xfd   :  { %556 = vmatpush3.msra.mxu1 %v355_v8 }
  0xfe   :  { %557 = vmatprep.subr.mxu1 %v631_v34 }
  0xff   :  { %558 = vmatpush3.msra.mxu1 %v354_v11 }
 0x100   :  { %559 = vmatprep.subr.mxu1 %v631_v34 }
 0x101   :  { %560 = vmatpush3.msra.mxu1 %v353_v14 }
 0x102   :  { %561 = vmatprep.subr.mxu1 %v631_v34 }
 0x103   :  { %562 = vmatpush3.msra.mxu1 %v352_v16 }
 0x104   :  { %563 = vmatprep.subr.mxu1 %v631_v34 }
 0x105   :  { %564 = vmatpush3.msra.mxu1 %v351_v19 }
 0x106   :  { %565 = vmatprep.subr.mxu1 %v631_v34 }
 0x107   :  { %566 = vmatpush3.msra.mxu1 %v350_v22 }
 0x108   :  { %567 = vmatprep.subr.mxu1 %v631_v34 }
 0x109   :  { %568 = vmatpush3.msra.mxu1 %v349_v24 }
 0x10a   :  { %569 = vmatprep.subr.mxu1 %v631_v34 }
 0x10b   :  { %570 = vmatpush3.msra.mxu1 %v348_v27 }
 0x10c   :  { %571 = vmatprep.subr.mxu1 %v631_v34 }
 0x10d   :  { %572 = vmatpush3.msra.mxu1 %v347_v30 }
 0x10e   :  { %573 = vmatprep.subr.mxu1 %v631_v34 }
 0x10f   :  { %574 = vmatpush3.msra.mxu1 %v346_v32 }
 0x110   :  { %575 = vmatprep.subr.mxu1 %v631_v34 }
 0x111   :  { %576 = vmatpush3.msra.mxu1 %v345_v33 }
 0x112   :  { %577 = vmatprep.subr.mxu1 %v631_v34 }
 0x113   :  { %578 = vmatpush3.msra.mxu1 %v344_v37 }
 0x114   :  { %580 = vmatmul.mubr.f32.vlgmr.msra.gmra.mxu1 %v360_v35 }
 0x1d4   :  { %v427_v36 = vpop.f32.mrf.mxu1 }
 0x1d5   :  { %v432_v38 = vrot.slane %v427_v36, 7 }
 0x1d6   :  { %v581_v40 = vpop.f32.mrf.mxu1 }
 0x1d7   :  { %v434_v41 = vsub.f32 %v427_v36, %v432_v38 }
 0x1d9   :  { %v439_v42 = vadd.f32 %v438_v39, %v434_v41 }
 0x1db   :  { %v440_v43 = vsub.f32 0.0, %v439_v42 }
 0x1dd   :  { %v441_v44 = vmul.f32 1.442695, %v440_v43 }
 0x1df   :  { %589 = vpow2.f32 %v441_v44 }
 0x1ec   :  { %v590_v45 = vpop.eup %589 }
 0x1ed   :  { %v443_v46 = vadd.f32 1.0, %v590_v45 }
 0x1ef   :  { %591 = vrcp.f32 %v443_v46 }
 0x1fc   :  { %v592_v47 = vpop.eup %591 }
 0x1fd   :  { %v446_v48 = vsub.f32 1.0, %v592_v47 }
 0x1ff   :  { %v448_v34 = vrot.slane %v446_v48, 1 }
 0x201   :  { %v451_v49 = vsel %vm450_vm2, %v448_v34, %v592_v47 }
 0x202   :  { %453 = vst.msk [vmem:[#allocation5] sm:$0x3] %vm452_vm3, %v451_v49 }
 0x203   :  { %616 = shalt.err (!%p613_p9)
}
 0x204   :  { %463 = dma.vmem_to_hbm [thread:$0]  %s461_s11, 32, %s824_s5, [#allocation3]  }
 0x205   :  { %627 = dma.done.wait [#allocation3], 32  }
 0x206   :  { %628 = vsyncadd [#allocation3], 4294967264 }
 0x207   :  { %467 = vsyncpa [#allocation3], 1 }
 0x208   :  { %468 = vsyncpa [#allocation4], 1 }

</bundles_post_ra>
